<compile_context>
chip_gen: v7x
topology: tpu7x:2x2x1
jax: 0.10.0
libtpu: 0.0.40
codegen_flags: <defaults>
</compile_context>

<pallas_src>
import jax
import jax.numpy as jnp
from jax import lax
from jax.experimental import pallas as pl
from jax.experimental.pallas import tpu as pltpu

N_EMBD = 384      # C in the PyTorch module
HEAD_SIZE = 64
BLOCK_SIZE = 256  # max T supported (matches the PyTorch tril buffer)
TQ = 128          # query rows per causal block inside the kernel


def _head_kernel(x_ref, w_ref, o_ref):
    # x_ref: (Bt, T, C) f32 | w_ref: (C, 3H) bf16 = [W_k | W_q*C**-0.5 | W_v]
    # o_ref: (Bt, T, H) f32
    Bt, T, C = x_ref.shape
    H = o_ref.shape[-1]

    # ---- fused QKV projection: one MXU matmul with M = Bt*T, N = 3H ---------
    xb = x_ref[...].astype(jnp.bfloat16)            # f32 -> bf16 cast in VMEM
    if T % 8 == 0:                                  # leading-dim merge is layout-free
        qkv = jnp.dot(xb.reshape(Bt * T, C), w_ref[...],
                      preferred_element_type=jnp.float32).reshape(Bt, T, 3 * H)
    else:
        # TODO(synk): per-batch fallback when T is not a multiple of the sublane tile.
        qkv = jnp.concatenate(
            [jnp.dot(xb[b], w_ref[...],
                     preferred_element_type=jnp.float32)[None] for b in range(Bt)],
            axis=0)
    qkv = qkv.astype(jnp.bfloat16)                  # bf16 qkv: halves bytes + slice relayout
    k = qkv[:, :, 0 * H:1 * H]
    q = qkv[:, :, 1 * H:2 * H]                      # already scaled by C**-0.5 (folded in W)
    v = qkv[:, :, 2 * H:3 * H]

    # Ones column appended to V: the PV matmul then also produces the softmax
    # row-sum in output column H (MXU has slack at N=64), replacing a cross-lane
    # XLU reduction over the full (Bt, TQ, T) probability tensor.
    v_ext = jnp.concatenate(
        [v, jnp.ones((Bt, T, 1), dtype=jnp.bfloat16)], axis=-1)     # (Bt, T, H+1)

    # ---- causal attention, blocked over query rows ---------------------------
    # Flash-style causal skipping: for query rows [q0, q1) only keys [0, q1)
    # are computed; fully-masked key blocks above the diagonal are skipped.
    q0 = 0
    while q0 < T:                                   # static Python loop (T is static)
        q_len = min(TQ, T - q0)
        q1 = q0 + q_len
        kv = q1                                     # causal key horizon for this block

        s = lax.dot_general(                        # (Bt, q_len, kv) f32
            q[:, q0:q1, :], k[:, :kv, :],
            dimension_numbers=(((2,), (2,)), ((0,), (0,))),
            preferred_element_type=jnp.float32)

        # masked_fill(tril == 0, -inf), restricted to this block's rows/cols.
        row = lax.broadcasted_iota(jnp.int32, (q_len, kv), 0) + q0
        col = lax.broadcasted_iota(jnp.int32, (q_len, kv), 1)
        s = jnp.where((col <= row)[None, :, :], s, -jnp.inf)

        m = jnp.max(s, axis=-1, keepdims=True)      # rows never fully masked -> finite
        p = jnp.exp(s - m).astype(jnp.bfloat16)     # (Bt, q_len, kv) bf16

        # TODO(synk): Dropout(p=0.2) on the attention matrix is identity in eval
        # mode; stochastic training-mode dropout is intentionally not applied.

        pv = lax.dot_general(                       # (Bt, q_len, H+1) f32
            p, v_ext[:, :kv, :],
            dimension_numbers=(((2,), (1,)), ((0,), (0,))),
            preferred_element_type=jnp.float32)

        denom = pv[:, :, H:H + 1]                   # softmax row-sum (from the MXU)
        out = pv[:, :, :H] * pl.reciprocal(denom, approx=True)
        o_ref[:, q0:q1, :] = out.astype(o_ref.dtype)
        q0 = q1


def _vmem_capacity_bytes():
    try:
        return int(getattr(pltpu.get_tpu_info(), "vmem_capacity_bytes", 64 << 20))
    except Exception:
        return 64 << 20   # conservative fallback: v7x per-TensorCore VMEM


def _num_tensorcores():
    try:
        kind = jax.devices()[0].device_kind.lower()
    except Exception:
        return 1
    # v5e / v6e: 1 TensorCore per chip; v7x: 2.
    return 2 if "v7" in kind else 1


def _choose_batch_tiling(B, T, C, H):
    """Pick batch-tile size, grid length and the VMEM limit, generation-aware."""
    cap = _vmem_capacity_bytes()
    vmem_limit = int(min(cap * 3 // 4, 100 << 20))
    budget = int(vmem_limit * 0.6)

    q_len = min(TQ, T)
    per_b = (
        2 * T * C * 4            # f32 x tile, double-buffered by the pipeline
        + 2 * T * H * 4          # f32 out tile, double-buffered
        + T * 3 * H * 6          # qkv: transient f32 + resident bf16
        + T * (H + 1) * 2        # v_ext (bf16)
        + q_len * T * 10         # per-q-block scores: f32 wei + f32/bf16 p
        + q_len * (H + 1) * 8    # pv block + normalized output block (f32)
    )
    weight_bytes = C * 3 * H * 2 * 2   # bf16 W_qkv, double-buffered
    bt_max = max(1, (budget - weight_bytes) // per_b)

    tiles = pl.cdiv(B, min(bt_max, B))
    if _num_tensorcores() > 1 and B >= 2:
        tiles = max(tiles, 2)          # feed both TensorCores on v7x
    bt = pl.cdiv(B, tiles)             # balanced tiles; last tile may be ragged
    grid0 = pl.cdiv(B, bt)
    return int(bt), int(grid0), vmem_limit


def head_forward(x, w_key, w_query, w_value):
    """x: (B, T, C) float32; weights: (C, H) float32 -> (B, T, H) float32."""
    B, T, C = x.shape
    H = w_key.shape[1]
    assert C == N_EMBD and T <= BLOCK_SIZE

    # Fuse the three projections into one (C, 3H) weight: [k | q*scale | v].
    # Folding C**-0.5 into W_q is free and removes VPU work from the score path.
    scale = jnp.float32(C) ** jnp.float32(-0.5)
    w_qkv = jnp.concatenate(
        [w_key.astype(jnp.float32),
         w_query.astype(jnp.float32) * scale,
         w_value.astype(jnp.float32)], axis=1).astype(jnp.bfloat16)   # (C, 3H)

    bt, grid0, vmem_limit = _choose_batch_tiling(B, T, C, H)

    cost = pl.CostEstimate(
        flops=2 * B * T * C * 3 * H + (2 * B * T * T * (2 * H + 1)) * 3 // 4,
        transcendentals=B * T * T * 3 // 4,
        bytes_accessed=x.size * 4 + w_qkv.size * 2 + B * T * H * 4,
    )

    return pl.pallas_call(
        _head_kernel,
        out_shape=jax.ShapeDtypeStruct((B, T, H), x.dtype),
        grid_spec=pltpu.PrefetchScalarGridSpec(
            num_scalar_prefetch=0,
            grid=(grid0,),
            in_specs=[
                pl.BlockSpec((bt, T, C), lambda b: (b, 0, 0)),   # x batch tile (f32)
                pl.BlockSpec((C, 3 * H), lambda b: (0, 0)),      # fused W_qkv (resident)
            ],
            out_specs=pl.BlockSpec((bt, T, H), lambda b: (b, 0, 0)),
        ),
        compiler_params=pltpu.CompilerParams(
            # TODO(synk): on v7x, verify "parallel" actually shards the batch axis
            # across both TensorCores; switch to pltpu.CORE_PARALLEL if it doesn't.
            dimension_semantics=("parallel",),
            vmem_limit_bytes=vmem_limit,
        ),
        cost_estimate=cost,
    )(x, w_qkv)


def _reference(x, w_key, w_query, w_value):
    """Pure-JAX f32 reference matching the PyTorch forward (eval mode)."""
    B, T, C = x.shape
    with jax.default_matmul_precision("float32"):
        k = x @ w_key
        q = x @ w_query
        v = x @ w_value
        wei = (q @ jnp.swapaxes(k, -2, -1)) * (C ** -0.5)
        mask = jnp.tril(jnp.ones((T, T), dtype=bool))
        wei = jnp.where(mask[None, :, :], wei, -jnp.inf)
        wei = jax.nn.softmax(wei, axis=-1)
        return wei @ v


if __name__ == "__main__":
    key = jax.random.PRNGKey(0)
    k_x, k_k, k_q, k_v = jax.random.split(key, 4)

    C, H = N_EMBD, HEAD_SIZE
    bound = 1.0 / (C ** 0.5)
    w_key = jax.random.uniform(k_k, (C, H), jnp.float32, -bound, bound)
    w_query = jax.random.uniform(k_q, (C, H), jnp.float32, -bound, bound)
    w_value = jax.random.uniform(k_v, (C, H), jnp.float32, -bound, bound)

    # --- small shape (B=2, T=8) ------------------------------------------------
    B, T = 2, 8
    x = jax.random.normal(k_x, (B, T, C), dtype=jnp.float32)
    out = jax.block_until_ready(head_forward(x, w_key, w_query, w_value))
    ref = _reference(x, w_key, w_query, w_value)
    assert out.shape == (B, T, H)
    assert not bool(jnp.any(jnp.isnan(out)))
    assert jnp.allclose(out, ref, atol=3e-2, rtol=3e-2), (
        float(jnp.max(jnp.abs(out - ref))))

    # --- full block_size (B=4, T=256): exercises causal q-block loop + tiling --
    B2, T2 = 4, BLOCK_SIZE
    x2 = jax.random.normal(k_x, (B2, T2, C), dtype=jnp.float32)
    out2 = jax.block_until_ready(head_forward(x2, w_key, w_query, w_value))
    ref2 = _reference(x2, w_key, w_query, w_value)
    assert out2.shape == (B2, T2, H)
    assert not bool(jnp.any(jnp.isnan(out2)))
    assert jnp.allclose(out2, ref2, atol=3e-2, rtol=3e-2), (
        float(jnp.max(jnp.abs(out2 - ref2))))

    print("KERNEL_OK")
</pallas_src>

<mosaic_0001>
module attributes {stable_mosaic.version = 11 : i64} {
  func.func @_head_kernel(%arg0: i32, %arg1: memref<2x8x384xf32, #tpu.memory_space<vmem>>, %arg2: memref<384x192xbf16, #tpu.memory_space<vmem>>, %arg3: memref<2x8x64xf32, #tpu.memory_space<vmem>>) attributes {dimension_semantics = [#tpu.dimension_semantics<parallel>], iteration_bounds = array<i64: 1>, scalar_prefetch = 0 : i64, scratch_operands = 0 : i64, tpu.core_type = #tpu.core_type<tc>, window_params = [{transform_indices = @transform_0, window_bounds = array<i64: 2, 8, 384>}, {pipeline_mode = #tpu.pipeline_mode<synchronous>, transform_indices = @transform_1, window_bounds = array<i64: 384, 192>}, {transform_indices = @transform_2, window_bounds = array<i64: 2, 8, 64>}]} {
    %c0 = arith.constant 0 : index
    %c0_0 = arith.constant 0 : index
    %c0_1 = arith.constant 0 : index
    %0 = vector.load %arg1[%c0, %c0_0, %c0_1] : memref<2x8x384xf32, #tpu.memory_space<vmem>>, vector<2x8x384xf32>
    %1 = arith.truncf %0 : vector<2x8x384xf32> to vector<2x8x384xbf16>
    %2 = vector.shape_cast %1 : vector<2x8x384xbf16> to vector<16x384xbf16>
    %c0_2 = arith.constant 0 : index
    %c0_3 = arith.constant 0 : index
    %3 = vector.load %arg2[%c0_2, %c0_3] : memref<384x192xbf16, #tpu.memory_space<vmem>>, vector<384x192xbf16>
    %cst = arith.constant dense<0.000000e+00> : vector<16x192xf32>
    %4 = tpu.matmul %2, %3, %cst {dimension_numbers = #tpu.dot_dimension_numbers<[1], [0], [0], [1], [0, 0, 1, 1], [], []>} : vector<16x384xbf16>, vector<384x192xbf16>, vector<16x192xf32> -> vector<16x192xf32>
    %5 = vector.shape_cast %4 : vector<16x192xf32> to vector<2x8x192xf32>
    %6 = arith.truncf %5 : vector<2x8x192xf32> to vector<2x8x192xbf16>
    %7 = vector.extract_strided_slice %6 {offsets = [0, 0, 0], sizes = [2, 8, 64], strides = [1, 1, 1]} : vector<2x8x192xbf16> to vector<2x8x64xbf16>
    %8 = vector.extract_strided_slice %6 {offsets = [0, 0, 64], sizes = [2, 8, 64], strides = [1, 1, 1]} : vector<2x8x192xbf16> to vector<2x8x64xbf16>
    %9 = vector.extract_strided_slice %6 {offsets = [0, 0, 128], sizes = [2, 8, 64], strides = [1, 1, 1]} : vector<2x8x192xbf16> to vector<2x8x64xbf16>
    %cst_4 = arith.constant 1.000000e+00 : bf16
    %10 = vector.broadcast %cst_4 : bf16 to vector<2x8x1xbf16>
    %11 = tpu.concatenate %9, %10 in 2 : vector<2x8x64xbf16>, vector<2x8x1xbf16> -> vector<2x8x65xbf16>
    %cst_5 = arith.constant dense<0.000000e+00> : vector<2x8x8xf32>
    %12 = tpu.matmul %8, %7, %cst_5 {dimension_numbers = #tpu.dot_dimension_numbers<[2], [2], [1], [1], [0, 0, 0, 1, 1, 1], [0], [0]>} : vector<2x8x64xbf16>, vector<2x8x64xbf16>, vector<2x8x8xf32> -> vector<2x8x8xf32>
    %13 = tpu.iota {dimensions = array<i32: 0>} : vector<8x8xi32>
    %c0_i32 = arith.constant 0 : i32
    %14 = vector.broadcast %c0_i32 : i32 to vector<8x8xi32>
    %15 = arith.addi %13, %14 : vector<8x8xi32>
    %16 = tpu.iota {dimensions = array<i32: 1>} : vector<8x8xi32>
    %17 = arith.cmpi sle, %16, %15 : vector<8x8xi32>
    %18 = vector.shape_cast %17 : vector<8x8xi1> to vector<1x8x8xi1>
    %cst_6 = arith.constant 0xFF800000 : f32
    %19 = vector.shape_cast %18 : vector<1x8x8xi1> to vector<1x8x8xi1>
    %20 = vector.broadcast %19 : vector<1x8x8xi1> to vector<2x8x8xi1>
    %21 = vector.broadcast %cst_6 : f32 to vector<2x8x8xf32>
    %22 = arith.select %20, %12, %21 : vector<2x8x8xi1>, vector<2x8x8xf32>
    %cst_7 = arith.constant dense<0xFF800000> : vector<2x8xf32>
    %23 = vector.multi_reduction <maximumf>, %22, %cst_7 [2] : vector<2x8x8xf32> to vector<2x8xf32>
    %24 = vector.shape_cast %23 : vector<2x8xf32> to vector<2x8x1xf32>
    %25 = vector.broadcast %24 : vector<2x8x1xf32> to vector<2x8x8xf32>
    %26 = arith.subf %22, %25 : vector<2x8x8xf32>
    %27 = math.exp %26 : vector<2x8x8xf32>
    %28 = arith.truncf %27 : vector<2x8x8xf32> to vector<2x8x8xbf16>
    %cst_8 = arith.constant dense<0.000000e+00> : vector<2x8x65xf32>
    %29 = tpu.matmul %28, %11, %cst_8 {dimension_numbers = #tpu.dot_dimension_numbers<[2], [1], [1], [2], [0, 0, 0, 1, 1, 2], [0], [0]>} : vector<2x8x8xbf16>, vector<2x8x65xbf16>, vector<2x8x65xf32> -> vector<2x8x65xf32>
    %30 = vector.extract_strided_slice %29 {offsets = [0, 0, 64], sizes = [2, 8, 1], strides = [1, 1, 1]} : vector<2x8x65xf32> to vector<2x8x1xf32>
    %31 = vector.extract_strided_slice %29 {offsets = [0, 0, 0], sizes = [2, 8, 64], strides = [1, 1, 1]} : vector<2x8x65xf32> to vector<2x8x64xf32>
    %32 = tpu.reciprocal %30 {approx = true} : vector<2x8x1xf32> -> vector<2x8x1xf32>
    %33 = vector.broadcast %32 : vector<2x8x1xf32> to vector<2x8x64xf32>
    %34 = arith.mulf %31, %33 : vector<2x8x64xf32>
    %c0_9 = arith.constant 0 : index
    %c0_10 = arith.constant 0 : index
    %c0_11 = arith.constant 0 : index
    %35 = vector.load %arg3[%c0_9, %c0_10, %c0_11] : memref<2x8x64xf32, #tpu.memory_space<vmem>>, vector<2x8x64xf32>
    tpu.vector_store %arg3[%c0_9, %c0_10, %c0_11], %34 {strides = array<i32>} : memref<2x8x64xf32, #tpu.memory_space<vmem>>, vector<2x8x64xf32>,
    return
  }
  func.func @transform_0(%arg0: i32) -> (i32, i32, i32) {
    %c0_i32 = arith.constant 0 : i32
    %c0_i32_0 = arith.constant 0 : i32
    %c0_i32_1 = arith.constant 0 : i32
    return %arg0, %c0_i32, %c0_i32_0 : i32, i32, i32
  }
  func.func @transform_1(%arg0: i32) -> (i32, i32) {
    %c0_i32 = arith.constant 0 : i32
    %c0_i32_0 = arith.constant 0 : i32
    %c0_i32_1 = arith.constant 0 : i32
    return %c0_i32, %c0_i32_0 : i32, i32
  }
  func.func @transform_2(%arg0: i32) -> (i32, i32, i32) {
    %c0_i32 = arith.constant 0 : i32
    %c0_i32_0 = arith.constant 0 : i32
    %c0_i32_1 = arith.constant 0 : i32
    return %arg0, %c0_i32, %c0_i32_0 : i32, i32, i32
  }
}

</mosaic_0001>

<bundles_post_ra>
// kernel: tpu_custom_call.1
= control target key start
LH: loop header
LB: loop body
LE: loop exit
PB: predicated region body
PF: predicated region fallthrough
CT: control target
= control target key end

     0   :  { %v881_v2 = vmov 0   ;;  %s1102_s0 = inlined_call_operand.vmem [shape: f32[2,8,384], index: 0, kind: input, shape index: {}]   ;;  %s1103_s1 = inlined_call_operand.vmem [shape: bf16[384,192], index: 1, kind: input, shape index: {}]   ;;  %s1104_s2 = inlined_call_operand.hbm [shape: f32[2,8,64], index: 2, kind: output, shape index: {}]  }
   0x1   :  { %v777_v0 = vld [vmem:[%s1103_s1 + $0x4] ss:$8 sps:$4 sm:$0xff]   ;;  %v779_v1 = vld [vmem:[%s1103_s1] ss:$8 sps:$4 sm:$0xff]   ;;  %407 = vmatprep.mubr.bf16.mxu1 %v881_v2  ;;  %v780_v3 = vld [vmem:[%s1103_s1 + $0x14] ss:$8 sps:$4 sm:$0xff]  }
   0x2   :  { %332 = vmatprep.subr.bf16.mxu0 %v777_v0  ;;  %v782_v4 = vld [vmem:[%s1103_s1 + $0x10] ss:$8 sps:$4 sm:$0xff]   ;;  %v783_v5 = vld [vmem:[%s1103_s1 + $0x24] ss:$8 sps:$4 sm:$0xff]   ;;  %v785_v6 = vld [vmem:[%s1103_s1 + $0x20] ss:$8 sps:$4 sm:$0xff]  }
   0x3   :  { %333 = vmatpush1.bf16.msra.mxu0 %v779_v1  ;;  %v786_v7 = vld [vmem:[%s1103_s1 + $0x34] ss:$8 sps:$4 sm:$0xff]   ;;  %v788_v8 = vld [vmem:[%s1103_s1 + $0x30] ss:$8 sps:$4 sm:$0xff]   ;;  %v801_v9 = vld [vmem:[%s1103_s1 + $0x104] ss:$8 sps:$4 sm:$0xff]  }
   0x4   :  { %334 = vmatprep.subr.bf16.mxu0 %v780_v3  ;;  %v803_v10 = vld [vmem:[%s1103_s1 + $0x100] ss:$8 sps:$4 sm:$0xff]   ;;  %v789_v11 = vld [vmem:[%s1103_s1 + $0x44] ss:$8 sps:$4 sm:$0xff]   ;;  %375 = vmatprep.subr.bf16.mxu1 %v801_v9  ;;  %v807_v12 = vld [vmem:[%s1103_s1 + $0x114] ss:$8 sps:$4 sm:$0xff]  }
   0x5   :  { %376 = vmatpush1.bf16.msra.mxu1 %v803_v10  ;;  %v809_v13 = vld [vmem:[%s1103_s1 + $0x110] ss:$8 sps:$4 sm:$0xff]   ;;  %v791_v14 = vld [vmem:[%s1103_s1 + $0x40] ss:$8 sps:$4 sm:$0xff]   ;;  %v792_v15 = vld [vmem:[%s1103_s1 + $0x54] ss:$8 sps:$4 sm:$0xff]  }
   0x6   :  { %377 = vmatprep.subr.bf16.mxu1 %v807_v12  ;;  %v813_v16 = vld [vmem:[%s1103_s1 + $0x124] ss:$8 sps:$4 sm:$0xff]   ;;  %v815_v17 = vld [vmem:[%s1103_s1 + $0x120] ss:$8 sps:$4 sm:$0xff]   ;;  %v794_v18 = vld [vmem:[%s1103_s1 + $0x50] ss:$8 sps:$4 sm:$0xff]  }
   0x7   :  { %335 = vmatpush1.bf16.msra.mxu0 %v782_v4  ;;  %v819_v19 = vld [vmem:[%s1103_s1 + $0x134] ss:$8 sps:$4 sm:$0xff]   ;;  %v795_v20 = vld [vmem:[%s1103_s1 + $0x64] ss:$8 sps:$4 sm:$0xff]   ;;  %v821_v21 = vld [vmem:[%s1103_s1 + $0x130] ss:$8 sps:$4 sm:$0xff]  }
   0x8   :  { %336 = vmatprep.subr.bf16.mxu0 %v783_v5  ;;  %v797_v22 = vld [vmem:[%s1103_s1 + $0x60] ss:$8 sps:$4 sm:$0xff]   ;;  %v825_v23 = vld [vmem:[%s1103_s1 + $0x144] ss:$8 sps:$4 sm:$0xff]   ;;  %v798_v24 = vld [vmem:[%s1103_s1 + $0x74] ss:$8 sps:$4 sm:$0xff]  }
   0x9   :  { %378 = vmatpush1.bf16.msra.mxu1 %v809_v13  ;;  %v827_v25 = vld [vmem:[%s1103_s1 + $0x140] ss:$8 sps:$4 sm:$0xff]   ;;  %v800_v26 = vld [vmem:[%s1103_s1 + $0x70] ss:$8 sps:$4 sm:$0xff]   ;;  %v831_v27 = vld [vmem:[%s1103_s1 + $0x154] ss:$8 sps:$4 sm:$0xff]  }
   0xa   :  { %379 = vmatprep.subr.bf16.mxu1 %v813_v16  ;;  %v804_v28 = vld [vmem:[%s1103_s1 + $0x84] ss:$8 sps:$4 sm:$0xff]   ;;  %v833_v29 = vld [vmem:[%s1103_s1 + $0x150] ss:$8 sps:$4 sm:$0xff]   ;;  %v806_v30 = vld [vmem:[%s1103_s1 + $0x80] ss:$8 sps:$4 sm:$0xff]  }
   0xb   :  { %337 = vmatpush1.bf16.msra.mxu0 %v785_v6  ;;  %v837_v31 = vld [vmem:[%s1103_s1 + $0x164] ss:$8 sps:$4 sm:$0xff]   ;;  %v810_v32 = vld [vmem:[%s1103_s1 + $0x94] ss:$8 sps:$4 sm:$0xff]   ;;  %v839_v35 = vld [vmem:[%s1103_s1 + $0x160] ss:$8 sps:$4 sm:$0xff]  }
   0xc   :  { %338 = vmatprep.subr.bf16.mxu0 %v786_v7  ;;  %v15_v33 = vld [vmem:[%s1102_s0 + $0x8] sm:$0xff]  ;;  %v18_v34 = vld [vmem:[%s1102_s0 + $0x20] sm:$0xff] }
   0xd   :  { %380 = vmatpush1.bf16.msra.mxu1 %v815_v17  ;;  %v729_v36 = vpack.c.bf16 %v18_v34, %v15_v33 }
   0xe   :  { %381 = vmatprep.subr.bf16.mxu1 %v819_v19 }
   0xf   :  { %339 = vmatpush1.bf16.msra.mxu0 %v788_v8 }
  0x10   :  { %340 = vmatprep.subr.bf16.mxu0 %v789_v11 }
  0x11   :  { %382 = vmatpush1.bf16.msra.mxu1 %v821_v21 }
  0x12   :  { %383 = vmatprep.subr.bf16.mxu1 %v825_v23 }
  0x13   :  { %341 = vmatpush1.bf16.msra.mxu0 %v791_v14 }
  0x14   :  { %342 = vmatprep.subr.bf16.mxu0 %v792_v15 }
  0x15   :  { %384 = vmatpush1.bf16.msra.mxu1 %v827_v25 }
  0x16   :  { %385 = vmatprep.subr.bf16.mxu1 %v831_v27 }
  0x17   :  { %343 = vmatpush1.bf16.msra.mxu0 %v794_v18 }
  0x18   :  { %344 = vmatprep.subr.bf16.mxu0 %v795_v20 }
  0x19   :  { %386 = vmatpush1.bf16.msra.mxu1 %v833_v29 }
  0x1b   :  { %345 = vmatpush1.bf16.msra.mxu0 %v797_v22 }
  0x1c   :  { %346 = vmatprep.subr.bf16.mxu0 %v798_v24 }
  0x1f   :  { %347 = vmatpush1.bf16.msra.mxu0 %v800_v26 }
  0x20   :  { %348 = vmatprep.subr.bf16.mxu0 %v804_v28 }
  0x21   :  { %7 = vsyncpa [#allocation3], 0  ;;  %v812_v37 = vld [vmem:[%s1103_s1 + $0x90] ss:$8 sps:$4 sm:$0xff]   ;;  %387 = vmatprep.subr.bf16.mxu1 %v837_v31  ;;  %v843_v38 = vld [vmem:[%s1103_s1 + $0x174] ss:$8 sps:$4 sm:$0xff]   ;;  %364 = vmatprep.mubr.bf16.mxu0 %v729_v36  ;;  %v526_v19 = vlaneseq }
  0x22   :  { %v816_v39 = vld [vmem:[%s1103_s1 + $0xa4] ss:$8 sps:$4 sm:$0xff]   ;;  %388 = vmatpush1.bf16.msra.mxu1 %v839_v35  ;;  %v845_v40 = vld [vmem:[%s1103_s1 + $0x170] ss:$8 sps:$4 sm:$0xff]   ;;  %v818_v43 = vld [vmem:[%s1103_s1 + $0xa0] ss:$8 sps:$4 sm:$0xff]  }
  0x23   :  { %349 = vmatpush1.bf16.msra.mxu0 %v806_v30  ;;  %v16_v41 = vld [vmem:[%s1102_s0 + $0x10] sm:$0xff]  ;;  %v19_v42 = vld [vmem:[%s1102_s0 + $0x28] sm:$0xff]  ;;  %389 = vmatprep.subr.bf16.mxu1 %v843_v38  ;;  %v14_v55 = vld [vmem:[%s1102_s0] sm:$0xff]  ;;  %v882_v58 = vmov 0.0   ;;  %vm883_vm0 = vmmov 0   ;;  %vm422_vm1 = vcmask 523264  }
  0x24   :  { %350 = vmatprep.subr.bf16.mxu0 %v810_v32  ;;  %v822_v44 = vld [vmem:[%s1103_s1 + $0xb4] ss:$8 sps:$4 sm:$0xff]   ;;  %v730_v45 = vpack.c.bf16 %v19_v42, %v16_v41  ;;  %v824_v46 = vld [vmem:[%s1103_s1 + $0xb0] ss:$8 sps:$4 sm:$0xff]   ;;  %v828_v47 = vld [vmem:[%s1103_s1 + $0xc4] ss:$8 sps:$4 sm:$0xff]  }
  0x25   :  { %v830_v48 = vld [vmem:[%s1103_s1 + $0xc0] ss:$8 sps:$4 sm:$0xff]   ;;  %v834_v49 = vld [vmem:[%s1103_s1 + $0xd4] ss:$8 sps:$4 sm:$0xff]   ;;  %v836_v50 = vld [vmem:[%s1103_s1 + $0xd0] ss:$8 sps:$4 sm:$0xff]  }
  0x26   :  { %390 = vmatpush1.bf16.msra.mxu1 %v845_v40  ;;  %v840_v51 = vld [vmem:[%s1103_s1 + $0xe4] ss:$8 sps:$4 sm:$0xff]   ;;  %v842_v52 = vld [vmem:[%s1103_s1 + $0xe0] ss:$8 sps:$4 sm:$0xff]   ;;  %v846_v53 = vld [vmem:[%s1103_s1 + $0xf4] ss:$8 sps:$4 sm:$0xff]  }
  0x27   :  { %351 = vmatpush1.bf16.msra.mxu0 %v812_v37  ;;  %v848_v54 = vld [vmem:[%s1103_s1 + $0xf0] ss:$8 sps:$4 sm:$0xff]   ;;  %739 = vmatprep.subr.bf16.mxu1 %v882_v58  ;;  %vm553_vm2 = vcmask 1043456   ;;  %v527_v20 = vshrl.u32 %v526_v19, 7  ;;  %v529_v21 = vand.u32 127, %v526_v19  ;;  %vm535_vm4 = vcmask 64512  }
  0x28   :  { %352 = vmatprep.subr.bf16.mxu0 %v816_v39  ;;  %v17_v56 = vld [vmem:[%s1102_s0 + $0x18] sm:$0xff]  ;;  %s884_s0 = smov 64   ;;  %s886_s1 = smov [#allocation2]  }
  0x29   :  { %408 = vmatmul.mubr.bf16.vlgmr.msra.gmra.mrb[0].mxu1 %v730_v45  ;;  %v728_v57 = vpack.c.bf16 %v17_v56, %v14_v55  ;;  %vm530_vm3 = vcmp.le.s32.totalorder %v529_v21, %v527_v20  ;;  %s662_s5 = sshll.u32 %s886_s1, 4  ;;  %s663_s5 = int_to_ptr.vmem [resolvable:$true] %s662_s5 }
  0x2a   :  { %741 = vmatprep.mubr.msk.bf16.mxu1 %vm883_vm0, %v882_v58  ;;  %s857_s6 = scalar_lea.vmem %s663_s5, 256  ;;  %p862_p1 = scmp.lt.s32.totalorder %s663_s5, %s663_s5 }
  0x2b   :  { %353 = vmatpush1.bf16.msra.mxu0 %v818_v43  ;;  %p858_p0 = scmp.ne.s32.totalorder %s663_s5, %s857_s6  ;;  %p863_p2 = scmp.lt.s32.totalorder %s857_s6, %s857_s6 }
  0x2c   :  { %354 = vmatprep.subr.bf16.mxu0 %v822_v44  ;;  %v885_v44 = vmov 64  }
  0x2d   :  { %775 = vset.pattern.permute.xlu0 %v885_v44  ;;  %776 = vset.pattern.permute.xlu1 %v885_v44  ;;  %p864_p3 = por %p863_p2, %p862_p1 }
  0x2f   :  { %355 = vmatpush1.bf16.msra.mxu0 %v824_v46  ;;  %p865_p4 = pnand %p864_p3, %p858_p0 }
  0x30   :  { %356 = vmatprep.subr.bf16.mxu0 %v828_v47 }
  0x33   :  { %357 = vmatpush1.bf16.msra.mxu0 %v830_v48 }
  0x34   :  { %358 = vmatprep.subr.bf16.mxu0 %v834_v49 }
  0x37   :  { %359 = vmatpush1.bf16.msra.mxu0 %v836_v50 }
  0x38   :  { %360 = vmatprep.subr.bf16.mxu0 %v840_v51 }
  0x3b   :  { %361 = vmatpush1.bf16.msra.mxu0 %v842_v52 }
  0x3c   :  { %362 = vmatprep.subr.bf16.mxu0 %v846_v53 }
  0x3f   :  { %363 = vmatpush1.bf16.msra.mxu0 %v848_v54 }
  0x42   :  { %365 = vmatmul.mubr.bf16.vlgmr.msra.gmra.mrb[0].mxu0 %v728_v57 }
  0xfc   :  { %v409_v59 = vpop.f32.mrb[0].mxu1 }
  0xfd   :  { %v411_v60 = vpop.f32.mrb[1].mxu1 }
  0xfe   :  { %v413_v61 = vpop.f32.mrb[2].mxu1 }
  0xff   :  { %v415_v62 = vpop.f32.mrb[3].mxu1 }
 0x115   :  { %v366_v63 = vpop.f32.mrb[0].mxu0 }
 0x116   :  { %v410_v0 = vadd.f32 %v409_v59, %v366_v63  ;;  %v368_v1 = vpop.f32.mrb[1].mxu0 }
 0x117   :  { %v412_v2 = vadd.f32 %v411_v60, %v368_v1  ;;  %v370_v3 = vpop.f32.mrb[2].mxu0 }
 0x118   :  { %v418_v4 = vpack.c.bf16 %v410_v0, %v410_v0  ;;  %v414_v5 = vadd.f32 %v413_v61, %v370_v3  ;;  %v372_v6 = vpop.f32.mrb[3].mxu0 }
 0x119   :  { %v416_v7 = vadd.f32 %v415_v62, %v372_v6  ;;  %v419_v15 = vpack.c.bf16 %v412_v2, %v412_v2 }
 0x11a   :  { %v435_v8 = vsel %vm422_vm1, %v418_v4, 0  ;;  %429 = vrot.lane.b32.xlu0 %v418_v4, %s884_s0  ;;  %v420_v10 = vpack.c.bf16 %v414_v5, %v414_v5 }
 0x11b   :  { %v421_v9 = vpack.c.bf16 %v416_v7, %v416_v7  ;;  %740 = vmatpush3.bf16.xpose.msra.mxu1 %v435_v8  ;;  %v425_v16 = vsel %vm422_vm1, %v419_v15, 1065369472 }
 0x11c   :  { %745 = vmatprep.subr.bf16.mxu1 %v882_v58  ;;  %v484_v14 = vsel %vm422_vm1, %v420_v10, 0  ;;  %v554_v18 = vsel %vm553_vm2, %v425_v16, 0 }
 0x11d   :  { %v427_v11 = vsel %vm422_vm1, %v421_v9, 1065369472 }
 0x11e   :  { %478 = vrot.lane.b32.xlu0 %v420_v10, %s884_s0  ;;  %v599_v12 = vsel %vm553_vm2, %v427_v11, 0 }
 0x18c   :  { %v430_v13 = vpop.permute.xlu0 %429 }
 0x18d   :  { %742 = vmatmul.mubr.msk.bf16.vlgmr.msra.gmra.mrb[4].mxu1 %vm422_vm1, %v430_v13 }
 0x18e   :  { %746 = vmatpush3.bf16.xpose.msra.mxu1 %v484_v14  ;;  %747 = vmatprep.mubr.msk.bf16.mxu1 %vm883_vm0, %v882_v58 }
 0x18f   :  { %751 = vmatprep.subr.bf16.mxu1 %v882_v58 }
 0x190   :  { %v479_v17 = vpop.permute.xlu0 %478 }
 0x195   :  { %748 = vmatmul.mubr.msk.bf16.vlgmr.msra.gmra.mrb[8].mxu1 %vm422_vm1, %v479_v17 }
 0x196   :  { %752 = vmatpush3.bf16.msra.mxu1 %v554_v18  ;;  %753 = vmatprep.mubr.msk.bf16.mxu1 %vm883_vm0, %v882_v58 }
 0x197   :  { %757 = vmatprep.subr.bf16.mxu1 %v882_v58 }
 0x260   :  { %v471_v22 = vpop.f32.mrb[4].mxu1 }
 0x261   :  { %v533_v23 = vsel %vm530_vm3, %v471_v22, -inf  ;;  %v743_v24 = vpop.f32.mrb[5].mxu1 }
 0x262   :  { %v474_v25 = vpop.f32.mrb[6].mxu1  ;;  %v536_v26 = vsel %vm535_vm4, %v533_v23, -inf }
 0x263   :  { %537 = vmax.xlane.f32.xlu1 %v536_v26  ;;  %v744_v27 = vpop.f32.mrb[7].mxu1 }
 0x268   :  { %v520_v28 = vpop.f32.mrb[8].mxu1 }
 0x269   :  { %v534_v29 = vsel %vm530_vm3, %v520_v28, -inf  ;;  %v749_v30 = vpop.f32.mrb[9].mxu1 }
 0x26a   :  { %v523_v31 = vpop.f32.mrb[10].mxu1  ;;  %v539_v32 = vsel %vm535_vm4, %v534_v29, -inf }
 0x26b   :  { %540 = vmax.xlane.f32.xlu1 %v539_v32  ;;  %v750_v33 = vpop.f32.mrb[11].mxu1 }
 0x2f0   :  { %v538_v34 = vpop.xlane.xlu1 %537 }
 0x2f1   :  { %v542_v35 = vsub.f32 %v533_v23, %v538_v34 }
 0x2f3   :  { %v544_v36 = vmul.f32 1.442695, %v542_v35 }
 0x2f5   :  { %849 = vpow2.f32 %v544_v36 }
 0x2f8   :  { %v541_v37 = vpop.xlane.xlu1 %540 }
 0x2f9   :  { %v543_v38 = vsub.f32 %v534_v29, %v541_v37 }
 0x2fb   :  { %v546_v39 = vmul.f32 1.442695, %v543_v38 }
 0x2fd   :  { %851 = vpow2.f32 %v546_v39 }
 0x2ff   :  { %v850_v40 = vpop.eup %849 }
 0x300   :  { %v548_v41 = vpack.c.bf16 %v850_v40, %v850_v40 }
 0x302   :  { %754 = vmatmul.mubr.msk.bf16.vlgmr.msra.gmra.mrb[12].mxu1 %vm535_vm4, %v548_v41 }
 0x303   :  { %758 = vmatpush3.bf16.msra.mxu1 %v599_v12  ;;  %759 = vmatprep.mubr.msk.bf16.mxu1 %vm883_vm0, %v882_v58 }
 0x307   :  { %v852_v42 = vpop.eup %851 }
 0x308   :  { %v549_v43 = vpack.c.bf16 %v852_v42, %v852_v42 }
 0x30a   :  { %760 = vmatmul.mubr.msk.bf16.vlgmr.msra.gmra.mrb[16].mxu1 %vm535_vm4, %v549_v43 }
 0x3d5   :  { %v590_v45 = vpop.f32.mrb[12].mxu1 }
 0x3d6   :  { %853 = vrcp.f32 %v590_v45  ;;  %v755_v46 = vpop.f32.mrb[13].mxu1 }
 0x3d7   :  { %v593_v47 = vpop.f32.mrb[14].mxu1 }
 0x3d8   :  { %v756_v48 = vpop.f32.mrb[15].mxu1 }
 0x3dd   :  { %v635_v49 = vpop.f32.mrb[16].mxu1 }
 0x3de   :  { %855 = vrcp.f32 %v635_v49  ;;  %v761_v50 = vpop.f32.mrb[17].mxu1 }
 0x3df   :  { %v638_v51 = vpop.f32.mrb[18].mxu1 }
 0x3e0   :  { %v854_v52 = vpop.eup %853  ;;  %v762_v53 = vpop.f32.mrb[19].mxu1 }
 0x3e1   :  { %645 = vperm.xlu0 %775, %v854_v52  }
 0x3e8   :  { %v856_v54 = vpop.eup %855 }
 0x3e9   :  { %650 = vperm.xlu1 %776, %v856_v54  }
 0x460   :  { %v646_v55 = vpop.permute.xlu0 %645 }
 0x461   :  { %v653_v56 = vmul.f32 %v646_v55, %v590_v45 }
 0x463   :  { %655 = vst.msk [vmem:[#allocation2] sm:$0xff] %vm422_vm1, %v653_v56 }
 0x468   :  { %v651_v57 = vpop.permute.xlu1 %650 }
 0x469   :  { %v654_v58 = vmul.f32 %v651_v57, %v635_v49 }
 0x46b   :  { %656 = vst.msk [vmem:[#allocation2 + $0x8] sm:$0xff] %vm422_vm1, %v654_v58 }
 0x46c   :  { %868 = shalt.err (!%p865_p4)
}
 0x46d   :  { %s869_s9 = scalar_lea.hbm %s1104_s2, 256 }
 0x46e   :  { %p870_p5 = scmp.ne.s32.totalorder %s1104_s2, %s869_s9  ;;  %p873_p6 = scmp.lt.u32.totalorder %s869_s9, %s1104_s2 }
 0x470   :  { %p875_p7 = pnand %p873_p6, %p870_p5 }
 0x472   :  { %878 = shalt.err (!%p875_p7)
}
 0x473   :  { %s887_s14 = smov 128   ;;  %s888_s15 = smov 8  }
 0x474   :  { %668 = dma.vmem_to_hbm [thread:$0]  %s663_s5, 256, %s1104_s2, [#allocation3], %s887_s14, %s887_s14, %s888_s15  }
 0x475   :  { %879 = dma.done.wait [#allocation3], 256  }
 0x476   :  { %880 = vsyncadd [#allocation3], 4294967040 }
 0x477   :  { %672 = vsyncpa [#allocation3], 1 }

</bundles_post_ra>
